<compile_context>
chip_gen: v6e
topology: v6e:2x2x1
jax: 0.10.0
libtpu: 0.0.40
codegen_flags: <defaults>
</compile_context>

<pallas_src>
import functools

import jax
import jax.numpy as jnp
from jax import lax
from jax.experimental import pallas as pl
from jax.experimental.pallas import tpu as pltpu


def bert_embeddings_kernel(ids_ref,                  # (B, S) int32  SMEM (scalar prefetch)
                           tts_ref,                  # (TS, 1) int32 VMEM block
                           w_hbm,                    # (V, H) word table, HBM (pl.ANY)
                           t_ref,                    # (T, H) token-type table, VMEM
                           pos_ref,                  # (TS, H) position tile, VMEM
                           gamma_ref, beta_ref,      # (1, H) VMEM
                           o_ref,                    # (TS, H) output block
                           wbuf,                     # (TS, H) VMEM scratch (gathered rows)
                           sems,                     # DMA semaphores, (depth,)
                           *, eps, depth):
    TS, H = o_ref.shape
    T = t_ref.shape[0]

    si = pl.program_id(0)
    b = pl.program_id(1)
    s0 = si * TS

    # ---- word embeddings: HBM row gather with `depth` in-flight DMAs ----
    def issue(i, slot):
        row = ids_ref[b, s0 + i]                      # scalar read from SMEM
        pltpu.make_async_copy(w_hbm.at[row], wbuf.at[i], sems.at[slot]).start()

    def wait(i, slot):
        # wait only depends on dst shape + semaphore; src index is irrelevant
        pltpu.make_async_copy(w_hbm.at[0], wbuf.at[i], sems.at[slot]).wait()

    @pl.loop(0, min(depth, TS))                       # prologue: fill the pipe
    def _(i):
        issue(i, i)

    @pl.loop(0, TS)                                   # steady: wait i, issue i+depth
    def _(i):
        slot = i % depth
        wait(i, slot)

        @pl.when(i + depth < TS)
        def _():
            issue(i + depth, slot)

    x = wbuf[...].astype(jnp.float32)                 # (TS, H)

    # ---- position embeddings: one vectorized add of the pre-tiled slab ----
    x = x + pos_ref[...].astype(jnp.float32)

    # ---- token-type embeddings: T tiny -> where-chain select + single add ----
    tts = tts_ref[...]                                # (TS, 1) int32
    tt = t_ref[pl.ds(0, 1), :].astype(jnp.float32)    # (1, H)
    for t in range(1, T):                             # static unroll (T-1 selects)
        tt = jnp.where(tts == t, t_ref[pl.ds(t, 1), :].astype(jnp.float32), tt)
    x = x + tt

    # ---- LayerNorm over hidden dim (stable two-pass variance) ----
    mean = jnp.mean(x, axis=-1, keepdims=True)
    xc = x - mean
    var = jnp.mean(xc * xc, axis=-1, keepdims=True)
    y = xc * lax.rsqrt(var + eps)
    o_ref[...] = (y * gamma_ref[...] + beta_ref[...]).astype(o_ref.dtype)


def _pick_seq_tile(S, max_tile=256):
    """Largest multiple-of-8 divisor of S not exceeding max_tile (or S itself)."""
    if S <= max_tile:
        return S
    for ts in range(max_tile - (max_tile % 8), 7, -8):
        if S % ts == 0:
            return ts
    return S


def bert_embeddings(input_ids, token_type_ids, word_emb, pos_emb, type_emb,
                    gamma, beta, *, eps=1e-12, max_seq_tile=256, dma_depth=8):
    B, S = input_ids.shape
    V, H = word_emb.shape
    P = pos_emb.shape[0]
    T = type_emb.shape[0]

    if token_type_ids is None:
        token_type_ids = jnp.zeros((B, S), jnp.int32)

    TS = _pick_seq_tile(S, max_seq_tile)
    n_s = S // TS

    # Position embeddings: when S <= P (and the tile shape is 8-aligned) the
    # position ids are arange(S), so every (TS, H) tile is a contiguous slice
    # of the table itself -> no wrapper-side gather / extra HBM traffic.
    if S <= P and TS % 8 == 0:
        pos_table = pos_emb
    else:
        pos_ids = jnp.clip(jnp.arange(S, dtype=jnp.int32), 0, P - 1)
        pos_table = jnp.take(pos_emb, pos_ids, axis=0)            # (S, H) fallback

    ids2 = input_ids.astype(jnp.int32)                            # (B, S) -> SMEM
    tts3 = token_type_ids.astype(jnp.int32).reshape(B, S, 1)      # vector for select
    gamma2 = gamma.reshape(1, H).astype(jnp.float32)
    beta2 = beta.reshape(1, H).astype(jnp.float32)

    kernel = functools.partial(bert_embeddings_kernel, eps=eps, depth=dma_depth)

    grid_spec = pltpu.PrefetchScalarGridSpec(
        num_scalar_prefetch=1,                                     # input_ids in SMEM
        grid=(n_s, B),                                             # b innermost
        in_specs=[
            pl.BlockSpec((None, TS, 1), lambda si, b, ids: (b, si, 0)),  # token_type_ids
            pl.BlockSpec(memory_space=pl.ANY),                           # word table (HBM)
            pl.BlockSpec((T, H), lambda si, b, ids: (0, 0)),             # token-type table
            pl.BlockSpec((TS, H), lambda si, b, ids: (si, 0)),           # position tile
            pl.BlockSpec((1, H), lambda si, b, ids: (0, 0)),             # LN gamma
            pl.BlockSpec((1, H), lambda si, b, ids: (0, 0)),             # LN beta
        ],
        out_specs=pl.BlockSpec((None, TS, H), lambda si, b, ids: (b, si, 0)),
        scratch_shapes=[
            pltpu.VMEM((TS, H), word_emb.dtype),                   # gathered word rows
            pltpu.SemaphoreType.DMA((dma_depth,)),                 # in-flight row DMAs
        ],
    )

    return pl.pallas_call(
        kernel,
        out_shape=jax.ShapeDtypeStruct((B, S, H), jnp.float32),
        grid_spec=grid_spec,
        compiler_params=pltpu.CompilerParams(
            dimension_semantics=("parallel", "parallel")),
    )(ids2, tts3, word_emb, type_emb, pos_table, gamma2, beta2)


if __name__ == "__main__":
    # Small config consistent with the module:
    # vocab_size=64, hidden_size=128, max_position_embeddings=32,
    # type_vocab_size=2, pad_token_id=0, layer_norm_eps=1e-12, batch=2, seq=8.
    B, S, H, V, P, T = 2, 8, 128, 64, 32, 2
    eps = 1e-12

    key = jax.random.PRNGKey(0)
    k1, k2, k3, k4, k5 = jax.random.split(key, 5)

    word_emb = (jax.random.normal(k1, (V, H), jnp.float32) * 0.02).at[0].set(0.0)  # padding_idx=0
    pos_emb = jax.random.normal(k2, (P, H), jnp.float32) * 0.02
    type_emb = jax.random.normal(k3, (T, H), jnp.float32) * 0.02
    gamma = jnp.ones((H,), jnp.float32)   # BertLayerNorm init
    beta = jnp.zeros((H,), jnp.float32)

    input_ids = jax.random.randint(k4, (B, S), 0, V, dtype=jnp.int32)
    token_type_ids = jax.random.randint(k5, (B, S), 0, T, dtype=jnp.int32)

    out = bert_embeddings(input_ids, token_type_ids, word_emb, pos_emb, type_emb,
                          gamma, beta, eps=eps)
    out = jax.block_until_ready(out)

    # Pure-JAX reference check (stable two-pass variance, same as kernel).
    pos_ids = jnp.clip(jnp.arange(S), 0, P - 1)
    x = word_emb[input_ids] + pos_emb[pos_ids][None, :, :] + type_emb[token_type_ids]
    mean = x.mean(-1, keepdims=True)
    var = ((x - mean) ** 2).mean(-1, keepdims=True)
    ref = (x - mean) / jnp.sqrt(var + eps) * gamma + beta
    assert out.shape == (B, S, H) and out.dtype == jnp.float32
    assert jnp.allclose(out, ref, atol=1e-5), float(jnp.abs(out - ref).max())

    # TODO(synk): dropout / bert_word_dropout are training-only (identity in eval) and omitted.
    print("KERNEL_OK")
</pallas_src>

<mosaic_0001>
module attributes {stable_mosaic.version = 11 : i64} {
  func.func @bert_embeddings_kernel(%arg0: i32, %arg1: i32, %arg2: memref<2x8xi32, #tpu.memory_space<smem>>, %arg3: memref<1x8x1xi32, #tpu.memory_space<vmem>>, %arg4: memref<64x128xf32, #tpu.memory_space<any>>, %arg5: memref<2x128xf32, #tpu.memory_space<vmem>>, %arg6: memref<8x128xf32, #tpu.memory_space<vmem>>, %arg7: memref<1x128xf32, #tpu.memory_space<vmem>>, %arg8: memref<1x128xf32, #tpu.memory_space<vmem>>, %arg9: memref<1x8x128xf32, #tpu.memory_space<vmem>>, %arg10: memref<8x128xf32, #tpu.memory_space<vmem>>, %arg11: memref<8x!tpu.dma_semaphore, #tpu.memory_space<semaphore_mem>>) attributes {dimension_semantics = [#tpu.dimension_semantics<parallel>, #tpu.dimension_semantics<parallel>], iteration_bounds = array<i64: 1, 2>, scalar_prefetch = 1 : i64, scratch_operands = 2 : i64, tpu.core_type = #tpu.core_type<tc>, window_params = [{transform_indices = @transform_0, window_bounds = array<i64: 1, 8, 1>}, {}, {pipeline_mode = #tpu.pipeline_mode<synchronous>, transform_indices = @transform_2, window_bounds = array<i64: 2, 128>}, {transform_indices = @transform_3, window_bounds = array<i64: 8, 128>}, {pipeline_mode = #tpu.pipeline_mode<synchronous>, transform_indices = @transform_4, window_bounds = array<i64: 1, 128>}, {pipeline_mode = #tpu.pipeline_mode<synchronous>, transform_indices = @transform_5, window_bounds = array<i64: 1, 128>}, {transform_indices = @transform_6, window_bounds = array<i64: 1, 8, 128>}]} {
    %c8_i32 = arith.constant 8 : i32
    %0 = arith.muli %arg0, %c8_i32 : i32
    %c0_i32 = arith.constant 0 : i32
    %c8_i32_0 = arith.constant 8 : i32
    %1 = arith.addi %c0_i32, %c8_i32_0 : i32
    %c1_i32 = arith.constant 1 : i32
    scf.for %arg12 = %c0_i32 to %1 step %c1_i32  : i32 {
      %c1_i32_27 = arith.constant 1 : i32
      %45 = arith.muli %arg12, %c1_i32_27 : i32
      %c0_i32_28 = arith.constant 0 : i32
      %46 = arith.addi %c0_i32_28, %45 : i32
      %47 = arith.addi %0, %46 : i32
      %48 = arith.index_cast %arg1 : i32 to index
      %49 = arith.index_cast %47 : i32 to index
      %50 = memref.load %arg2[%48, %49] : memref<2x8xi32, #tpu.memory_space<smem>>
      %c0_i32_29 = arith.constant 0 : i32
      %51 = tpu.memref_slice %arg4[%50, %c0_i32_29] : memref<64x128xf32, #tpu.memory_space<any>> -> memref<1x128xf32, #tpu.memory_space<any>>
      %52 = tpu.memref_squeeze %51 : memref<1x128xf32, #tpu.memory_space<any>> -> memref<128xf32, #tpu.memory_space<any>>
      %c0_i32_30 = arith.constant 0 : i32
      %53 = tpu.memref_slice %arg10[%46, %c0_i32_30] : memref<8x128xf32, #tpu.memory_space<vmem>> -> memref<1x128xf32, #tpu.memory_space<vmem>>
      %54 = tpu.memref_squeeze %53 : memref<1x128xf32, #tpu.memory_space<vmem>> -> memref<128xf32, #tpu.memory_space<vmem>>
      %55 = tpu.memref_slice %arg11[%46] : memref<8x!tpu.dma_semaphore, #tpu.memory_space<semaphore_mem>> -> memref<1x!tpu.dma_semaphore, #tpu.memory_space<semaphore_mem>>
      %56 = tpu.memref_squeeze %55 : memref<1x!tpu.dma_semaphore, #tpu.memory_space<semaphore_mem>> -> memref<!tpu.dma_semaphore, #tpu.memory_space<semaphore_mem>>
      tpu.enqueue_dma source(%52 : memref<128xf32, #tpu.memory_space<any>>) target(%54 : memref<128xf32, #tpu.memory_space<vmem>>) target_semaphore(%56 : memref<!tpu.dma_semaphore, #tpu.memory_space<semaphore_mem>>)
    }
    %c8_i32_1 = arith.constant 8 : i32
    %c0_i32_2 = arith.constant 0 : i32
    %c8_i32_3 = arith.constant 8 : i32
    %2 = arith.addi %c0_i32_2, %c8_i32_3 : i32
    %c1_i32_4 = arith.constant 1 : i32
    scf.for %arg12 = %c0_i32_2 to %2 step %c1_i32_4  : i32 {
      %c1_i32_27 = arith.constant 1 : i32
      %45 = arith.muli %arg12, %c1_i32_27 : i32
      %c0_i32_28 = arith.constant 0 : i32
      %46 = arith.addi %c0_i32_28, %45 : i32
      %c8_i32_29 = arith.constant 8 : i32
      %c0_i32_30 = arith.constant 0 : i32
      %47 = arith.cmpi eq, %c8_i32_29, %c0_i32_30 : i32
      %c1_i32_31 = arith.constant 1 : i32
      %48 = arith.select %47, %c1_i32_31, %c8_i32_29 : i32
      %49 = arith.remsi %46, %48 : i32
      %c0_i32_32 = arith.constant 0 : i32
      %50 = arith.cmpi ne, %49, %c0_i32_32 : i32
      %c0_i32_33 = arith.constant 0 : i32
      %51 = arith.cmpi slt, %49, %c0_i32_33 : i32
      %c0_i32_34 = arith.constant 0 : i32
      %52 = arith.cmpi slt, %48, %c0_i32_34 : i32
      %53 = arith.xori %51, %52 : i1
      %54 = arith.andi %53, %50 : i1
      %55 = arith.addi %49, %48 : i32
      %56 = arith.select %54, %55, %49 : i32
      %c0_i32_35 = arith.constant 0 : i32
      %c0_i32_36 = arith.constant 0 : i32
      %57 = tpu.memref_slice %arg4[%c0_i32_35, %c0_i32_36] : memref<64x128xf32, #tpu.memory_space<any>> -> memref<1x128xf32, #tpu.memory_space<any>>
      %58 = tpu.memref_squeeze %57 : memref<1x128xf32, #tpu.memory_space<any>> -> memref<128xf32, #tpu.memory_space<any>>
      %c0_i32_37 = arith.constant 0 : i32
      %59 = tpu.memref_slice %arg10[%46, %c0_i32_37] : memref<8x128xf32, #tpu.memory_space<vmem>> -> memref<1x128xf32, #tpu.memory_space<vmem>>
      %60 = tpu.memref_squeeze %59 : memref<1x128xf32, #tpu.memory_space<vmem>> -> memref<128xf32, #tpu.memory_space<vmem>>
      %61 = tpu.memref_slice %arg11[%56] : memref<8x!tpu.dma_semaphore, #tpu.memory_space<semaphore_mem>> -> memref<1x!tpu.dma_semaphore, #tpu.memory_space<semaphore_mem>>
      %62 = tpu.memref_squeeze %61 : memref<1x!tpu.dma_semaphore, #tpu.memory_space<semaphore_mem>> -> memref<!tpu.dma_semaphore, #tpu.memory_space<semaphore_mem>>
      tpu.wait_dma2 semaphore(%62 : memref<!tpu.dma_semaphore, #tpu.memory_space<semaphore_mem>>) src(%58 : memref<128xf32, #tpu.memory_space<any>>) dst(%60 : memref<128xf32, #tpu.memory_space<vmem>>)
      %c8_i32_38 = arith.constant 8 : i32
      %63 = arith.addi %46, %c8_i32_38 : i32
      %c8_i32_39 = arith.constant 8 : i32
      %64 = arith.cmpi slt, %63, %c8_i32_39 : i32
      %65 = arith.extui %64 : i1 to i32
      %c0_i32_40 = arith.constant 0 : i32
      %66 = arith.cmpi ne, %65, %c0_i32_40 : i32
      scf.if %66 {
        %c8_i32_41 = arith.constant 8 : i32
        %67 = arith.addi %46, %c8_i32_41 : i32
        %68 = arith.addi %0, %67 : i32
        %69 = arith.index_cast %arg1 : i32 to index
        %70 = arith.index_cast %68 : i32 to index
        %71 = memref.load %arg2[%69, %70] : memref<2x8xi32, #tpu.memory_space<smem>>
        %c0_i32_42 = arith.constant 0 : i32
        %72 = tpu.memref_slice %arg4[%71, %c0_i32_42] : memref<64x128xf32, #tpu.memory_space<any>> -> memref<1x128xf32, #tpu.memory_space<any>>
        %73 = tpu.memref_squeeze %72 : memref<1x128xf32, #tpu.memory_space<any>> -> memref<128xf32, #tpu.memory_space<any>>
        %c0_i32_43 = arith.constant 0 : i32
        %74 = tpu.memref_slice %arg10[%67, %c0_i32_43] : memref<8x128xf32, #tpu.memory_space<vmem>> -> memref<1x128xf32, #tpu.memory_space<vmem>>
        %75 = tpu.memref_squeeze %74 : memref<1x128xf32, #tpu.memory_space<vmem>> -> memref<128xf32, #tpu.memory_space<vmem>>
        %76 = tpu.memref_slice %arg11[%56] : memref<8x!tpu.dma_semaphore, #tpu.memory_space<semaphore_mem>> -> memref<1x!tpu.dma_semaphore, #tpu.memory_space<semaphore_mem>>
        %77 = tpu.memref_squeeze %76 : memref<1x!tpu.dma_semaphore, #tpu.memory_space<semaphore_mem>> -> memref<!tpu.dma_semaphore, #tpu.memory_space<semaphore_mem>>
        tpu.enqueue_dma source(%73 : memref<128xf32, #tpu.memory_space<any>>) target(%75 : memref<128xf32, #tpu.memory_space<vmem>>) target_semaphore(%77 : memref<!tpu.dma_semaphore, #tpu.memory_space<semaphore_mem>>)
      } else {
      }
    }
    %c8_i32_5 = arith.constant 8 : i32
    %c0 = arith.constant 0 : index
    %c0_6 = arith.constant 0 : index
    %3 = vector.load %arg10[%c0, %c0_6] : memref<8x128xf32, #tpu.memory_space<vmem>>, vector<8x128xf32>
    %c0_7 = arith.constant 0 : index
    %c0_8 = arith.constant 0 : index
    %4 = vector.load %arg6[%c0_7, %c0_8] : memref<8x128xf32, #tpu.memory_space<vmem>>, vector<8x128xf32>
    %5 = arith.addf %3, %4 : vector<8x128xf32>
    %c0_9 = arith.constant 0 : index
    %c0_10 = arith.constant 0 : index
    %c0_11 = arith.constant 0 : index
    %6 = vector.load %arg3[%c0_9, %c0_10, %c0_11] : memref<1x8x1xi32, #tpu.memory_space<vmem>>, vector<1x8x1xi32>
    %7 = vector.shape_cast %6 : vector<1x8x1xi32> to vector<8x1xi32>
    %c0_12 = arith.constant 0 : index
    %c0_13 = arith.constant 0 : index
    %8 = vector.load %arg5[%c0_12, %c0_13] : memref<2x128xf32, #tpu.memory_space<vmem>>, vector<1x128xf32>
    %c1_i32_14 = arith.constant 1 : i32
    %9 = vector.broadcast %c1_i32_14 : i32 to vector<8x1xi32>
    %10 = arith.cmpi eq, %7, %9 : vector<8x1xi32>
    %c1 = arith.constant 1 : index
    %c0_15 = arith.constant 0 : index
    %11 = vector.load %arg5[%c1, %c0_15] : memref<2x128xf32, #tpu.memory_space<vmem>>, vector<1x128xf32>
    %12 = vector.shape_cast %10 : vector<8x1xi1> to vector<8x1xi1>
    %13 = vector.broadcast %12 : vector<8x1xi1> to vector<8x128xi1>
    %14 = vector.shape_cast %11 : vector<1x128xf32> to vector<1x128xf32>
    %15 = vector.broadcast %14 : vector<1x128xf32> to vector<8x128xf32>
    %16 = vector.shape_cast %8 : vector<1x128xf32> to vector<1x128xf32>
    %17 = vector.broadcast %16 : vector<1x128xf32> to vector<8x128xf32>
    %18 = arith.select %13, %15, %17 : vector<8x128xi1>, vector<8x128xf32>
    %19 = arith.addf %5, %18 : vector<8x128xf32>
    %cst = arith.constant dense<0.000000e+00> : vector<8xf32>
    %20 = vector.multi_reduction <add>, %19, %cst [1] : vector<8x128xf32> to vector<8xf32>
    %21 = vector.shape_cast %20 : vector<8xf32> to vector<8x1xf32>
    %cst_16 = arith.constant 1.280000e+02 : f32
    %22 = vector.broadcast %cst_16 : f32 to vector<8x1xf32>
    %23 = arith.divf %21, %22 : vector<8x1xf32>
    %24 = vector.broadcast %23 : vector<8x1xf32> to vector<8x128xf32>
    %25 = arith.subf %19, %24 : vector<8x128xf32>
    %26 = arith.mulf %25, %25 : vector<8x128xf32>
    %cst_17 = arith.constant dense<0.000000e+00> : vector<8xf32>
    %27 = vector.multi_reduction <add>, %26, %cst_17 [1] : vector<8x128xf32> to vector<8xf32>
    %28 = vector.shape_cast %27 : vector<8xf32> to vector<8x1xf32>
    %cst_18 = arith.constant 1.280000e+02 : f32
    %29 = vector.broadcast %cst_18 : f32 to vector<8x1xf32>
    %30 = arith.divf %28, %29 : vector<8x1xf32>
    %cst_19 = arith.constant 9.99999996E-13 : f32
    %31 = vector.broadcast %cst_19 : f32 to vector<8x1xf32>
    %32 = arith.addf %30, %31 : vector<8x1xf32>
    %33 = math.rsqrt %32 : vector<8x1xf32>
    %34 = vector.broadcast %33 : vector<8x1xf32> to vector<8x128xf32>
    %35 = arith.mulf %25, %34 : vector<8x128xf32>
    %c0_20 = arith.constant 0 : index
    %c0_21 = arith.constant 0 : index
    %36 = vector.load %arg7[%c0_20, %c0_21] : memref<1x128xf32, #tpu.memory_space<vmem>>, vector<1x128xf32>
    %37 = vector.broadcast %36 : vector<1x128xf32> to vector<8x128xf32>
    %38 = arith.mulf %35, %37 : vector<8x128xf32>
    %c0_22 = arith.constant 0 : index
    %c0_23 = arith.constant 0 : index
    %39 = vector.load %arg8[%c0_22, %c0_23] : memref<1x128xf32, #tpu.memory_space<vmem>>, vector<1x128xf32>
    %40 = vector.broadcast %39 : vector<1x128xf32> to vector<8x128xf32>
    %41 = arith.addf %38, %40 : vector<8x128xf32>
    %c0_24 = arith.constant 0 : index
    %c0_25 = arith.constant 0 : index
    %c0_26 = arith.constant 0 : index
    %42 = vector.load %arg9[%c0_24, %c0_25, %c0_26] : memref<1x8x128xf32, #tpu.memory_space<vmem>>, vector<1x8x128xf32>
    %43 = vector.shape_cast %42 : vector<1x8x128xf32> to vector<8x128xf32>
    %44 = vector.shape_cast %41 : vector<8x128xf32> to vector<1x8x128xf32>
    tpu.vector_store %arg9[%c0_24, %c0_25, %c0_26], %44 {strides = array<i32>} : memref<1x8x128xf32, #tpu.memory_space<vmem>>, vector<1x8x128xf32>,
    return
  }
  func.func @transform_0(%arg0: i32, %arg1: i32, %arg2: memref<2x8xi32, #tpu.memory_space<smem>>) -> (i32, i32, i32) {
    %c0_i32 = arith.constant 0 : i32
    %c0_i32_0 = arith.constant 0 : i32
    return %arg1, %arg0, %c0_i32 : i32, i32, i32
  }
  func.func @transform_2(%arg0: i32, %arg1: i32, %arg2: memref<2x8xi32, #tpu.memory_space<smem>>) -> (i32, i32) {
    %c0_i32 = arith.constant 0 : i32
    %c0_i32_0 = arith.constant 0 : i32
    %c0_i32_1 = arith.constant 0 : i32
    return %c0_i32, %c0_i32_0 : i32, i32
  }
  func.func @transform_3(%arg0: i32, %arg1: i32, %arg2: memref<2x8xi32, #tpu.memory_space<smem>>) -> (i32, i32) {
    %c0_i32 = arith.constant 0 : i32
    %c0_i32_0 = arith.constant 0 : i32
    return %arg0, %c0_i32 : i32, i32
  }
  func.func @transform_4(%arg0: i32, %arg1: i32, %arg2: memref<2x8xi32, #tpu.memory_space<smem>>) -> (i32, i32) {
    %c0_i32 = arith.constant 0 : i32
    %c0_i32_0 = arith.constant 0 : i32
    %c0_i32_1 = arith.constant 0 : i32
    return %c0_i32, %c0_i32_0 : i32, i32
  }
  func.func @transform_5(%arg0: i32, %arg1: i32, %arg2: memref<2x8xi32, #tpu.memory_space<smem>>) -> (i32, i32) {
    %c0_i32 = arith.constant 0 : i32
    %c0_i32_0 = arith.constant 0 : i32
    %c0_i32_1 = arith.constant 0 : i32
    return %c0_i32, %c0_i32_0 : i32, i32
  }
  func.func @transform_6(%arg0: i32, %arg1: i32, %arg2: memref<2x8xi32, #tpu.memory_space<smem>>) -> (i32, i32, i32) {
    %c0_i32 = arith.constant 0 : i32
    %c0_i32_0 = arith.constant 0 : i32
    return %arg1, %arg0, %c0_i32 : i32, i32, i32
  }
}

</mosaic_0001>

<bundles_post_ra>
// kernel: tpu_custom_call.1
= control target key start
LH: loop header
LB: loop body
LE: loop exit
PB: predicated region body
PF: predicated region fallthrough
CT: control target
= control target key end

     0   :  { %s1164_s0 = inlined_call_operand.vmem [shape: s32[2,8], index: 0, kind: input, shape index: {}]   ;;  %s1165_s1 = inlined_call_operand.vmem [shape: s32[2,8,1], index: 1, kind: input, shape index: {}]   ;;  %s1166_s2 = inlined_call_operand.hbm [shape: f32[64,128], index: 2, kind: input, shape index: {}]   ;;  %s1167_s3 = inlined_call_operand.vmem [shape: f32[2,128], index: 3, kind: input, shape index: {}]   ;;  %s1168_s4 = inlined_call_operand.hbm [shape: f32[32,128], index: 4, kind: input, shape index: {}]   ;;  %s1169_s5 = inlined_call_operand.vmem [shape: f32[1,128], index: 5, kind: input, shape index: {}]   ;;  %s1170_s6 = inlined_call_operand.vmem [shape: f32[1,128], index: 6, kind: input, shape index: {}]   ;;  %s1171_s7 = inlined_call_operand.hbm [shape: f32[2,8,128], index: 7, kind: output, shape index: {}]  }
   0x1   :  { %1179 = sst [smem:[#allocation26_spill]] %s1165_s1  ;;  %s12_s26 = sshll.u32 %s1164_s0, 4  ;;  %s13_s26 = int_to_ptr.vmem [resolvable:$true] %s12_s26 }
   0x2   :  { %1180 = sst [smem:[#allocation27_spill]] %s1168_s4  ;;  %s703_s27 = scalar_lea.vmem %s13_s26, 32 }
   0x3   :  { %p704_p0 = scmp.ne.s32.totalorder %s13_s26, %s703_s27  ;;  %p708_p1 = scmp.lt.s32.totalorder %s13_s26, %s13_s26 }
   0x4   :  { %p709_p2 = scmp.lt.s32.totalorder %s703_s27, %s703_s27 }
   0x6   :  { %p710_p3 = por %p709_p2, %p708_p1 }
   0x8   :  { %p711_p4 = pnand %p710_p3, %p704_p0 }
   0xa   :  { %714 = shalt.err (!%p711_p4)  }
   0xb   :  { %s891_s28 = smov [#allocation5]  }
   0xc   :  { %15 = dma.vmem_to_smem %s13_s26, 32, %s891_s28, [#allocation4] }
   0xd   :  { %847 = dma.done.wait [#allocation4], 32 }
   0xe   :  { %848 = vsyncadd [#allocation4], 4294967264 }
   0xf   :  { %17 = sfence }
  0x10   :  { %18 = vsyncpa [#allocation7], 0 }
  0x11   :  { %19 = vsyncpa [#allocation8], 0 }
  0x12   :  { %21 = vsyncpa [#allocation8 + $0x1], 0  ;;  %s939_s29 = smov 0   ;;  %s941_s30 = smov 0  }
  0x13   :  { %s943_s0 = smov 0   ;;  %s945_s8 = smov 0  }
  0x14   :  { %s947_s9 = smov 0   ;;  %s949_s10 = smov 0  }
  0x15 LB: > { %1181 = sst [smem:[#allocation21_spill]] %s869_s0  ;;  %s578_s11 = sadd.s32 4294967295, %s881_s10   ;;  %s881_s10 = sphi %s949_s10, %s27_s10   ;;  %s877_s9 = sphi %s947_s9, %s1202_s9   ;;  %s873_s8 = sphi %s945_s8, %s1201_s8   ;;  %s869_s0 = sphi %s943_s0, %s1200_s0   ;;  %s865_s30 = sphi %s941_s30, %s1204_s30   ;;  %s861_s29 = sphi %s939_s29, %s1203_s29  }
  0x16   : > { %1182 = sst [smem:[#allocation22_spill]] %s877_s9  ;;  %s579_s12 = sadd.s32 4294967294, %s881_s10  }
  0x17   : > { %s36_s13 = sadd.s32 1, %s877_s9  ;;  %s165_s14 = sadd.s32 1, %s869_s0 }
  0x18   : > { %p37_p5 = scmp.ge.s32.totalorder %s36_s13, 2  ;;  %p175_p6 = scmp.ne.s32.totalorder %s869_s0, %s865_s30 }
  0x19   : > { %p176_p7 = scmp.eq.s32.totalorder %s578_s11, 1  ;;  %p181_p8 = scmp.ne.s32.totalorder %s865_s30, %s861_s29 }
  0x1a   : > { %s1206_s13 = smov (%p37_p5, %s36_s13), 0  ;;  %p182_p10 = scmp.eq.s32.totalorder %s579_s12, 1 }
  0x1b   : > { %1183 = sst [smem:[#allocation23_spill]] %s1206_s13  ;;  %p979_p9 = por %p176_p7, %p175_p6 }
  0x1c   : > { %s160_s16 = ssub.s32 %s877_s9, %s1206_s13  ;;  %p580_p11 = scmp.ge.s32.totalorder %s881_s10, 1 }
  0x1d   : > { %p163_p12 = scmp.eq.s32.totalorder %s160_s16, 0  ;;  %p986_p13 = por %p182_p10, %p181_p8 }
  0x1e   : > { %p189_p0 = scmp.lt.s32.totalorder %s881_s10, 3  ;;  %p998_p2 = scmp.eq.s32.totalorder %s578_s11, 0 }
  0x1f   : > { %s1185_s17 = scalar_select %p986_p13, 1, 0 }
  0x20   : > { %s992_s18 = scalar_select %p163_p12, %s869_s0, %s165_s14  }
  0x21   : > { %1186 = sst [smem:[#allocation24_spill]] %s1185_s17  ;;  %p994_p1 = pnand %p580_p11, %p189_p0 }
  0x22   : > { %1187 = sst [smem:[#allocation25_spill]] %s992_s18  ;;  %s892_s21 = smov [#allocation6]  }
  0x23   : > { %p621_p3 = pneg %p994_p1  ;;  %s207_s22 = sshll.u32 %s892_s21, 4  ;;  %s208_s22 = int_to_ptr.vmem [resolvable:$true] %s207_s22 }
  0x24   : > { %s726_s23 = scalar_lea.vmem %s208_s22, 128  ;;  %p734_p10 = scmp.lt.s32.totalorder %s208_s22, %s208_s22 }
  0x25   : > { %p622_p4 = pnand %p998_p2, %p621_p3  ;;  %p727_p6 = scmp.ne.s32.totalorder %s208_s22, %s726_s23 }
  0x26   : > { %p735_p11 = scmp.lt.s32.totalorder %s726_s23, %s726_s23 }
  0x27   : > { %p717_p5 = pneg %p622_p4 }
  0x28   : > { %p736_p12 = por %p735_p11, %p734_p10 }
  0x29   : > { %p729_p7 = pnand %p727_p6, %p717_p5 }
  0x2b   : > { %p730_p8 = pneg %p729_p7 }
  0x2d   : > { %p737_p0 = pnand %p736_p12, %p730_p8 }
  0x2f   : > { %740 = shalt.err (!%p737_p0)
}
  0x30   : > { %s1190_s4 = sld [smem:[#allocation27_spill]] }
  0x32   : > { %236 = sbr.rel (%p994_p1) target bundleno = 601 (0x259), region = 40 }
  0x36   : > { %624 = dma.hbm_to_vmem [thread:$0]  (!%p622_p4), %s1190_s4, 128, %s208_s22, [#allocation7]  }
  0x37   : > { %850 = dma.done.wait (%p998_p2), [#allocation7], 128  }
  0x38   : > { %852 = vsyncadd (%p998_p2), [#allocation7], 4294967168  ;;  %s1172_s26 = sand.u32 1, %s865_s30   ;;  %p266_p3 = scmp.lt.s32.totalorder %s873_s8, 1 }
  0x39   : > { %s1019_s27 = sshll.u32 %s1172_s26, 3  ;;  %s1191_s1 = sld [smem:[#allocation26_spill]] }
  0x3a   : > { %s267_s28 = scalar_select %p266_p3, %s873_s8, 1 }
  0x3b   : > { %s1028_s20 = smov 0  }
  0x3c   : > { %s586_s11 = sshll.u32 %s267_s28, 3 }
  0x3f   : > { %s1025_s16 = scalar_lea.vmem %s1191_s1, %s586_s11 }
  0x40 LB: >> { %s281_s21 = sshra.s32 %s885_s20, 7  ;;  %s286_s22 = sand.u32 127, %s885_s20  ;;  %s885_s20 = sphi %s1028_s20, %s279_s20  }
  0x41   : >> { %s283_s23 = sadd.s32 %s873_s8, %s281_s21  ;;  %s291_s11 = scalar_lea.vmem [#allocation2], %s885_s20 }
  0x42   : >> { %s587_s24 = sshll.u32 %s283_s23, 7  ;;  %s300_s12 = sshll.u32 %s291_s11, 4  ;;  %s301_s12 = int_to_ptr.vmem [resolvable:$true] %s300_s12 }
  0x43   : >> { %s287_s25 = sadd.s32 %s587_s24, %s286_s22  ;;  %s292_s4 = scalar_lea.sflag [#allocation3], %s885_s20 }
  0x44   : >> { %s288_s28 = sld [smem:[#allocation5 + %s287_s25]]  ;;  %s1178_s0 = scalar_lea.hbm %s1166_s2, 1024 }
  0x4a   : >> { %s588_s14 = sshll.u32 %s288_s28, 4 }
  0x4b   : >> { %s290_s1 = scalar_lea.hbm %s1166_s2, %s588_s14 }
  0x4c   : >> { %s741_s13 = scalar_lea.hbm %s290_s1, 16  ;;  %p744_p2 = scmp.lt.s32.totalorder %s290_s1, %s1166_s2 }
  0x4d   : >> { %p742_p1 = scmp.ne.s32.totalorder %s290_s1, %s741_s13  ;;  %p745_p4 = scmp.lt.s32.totalorder %s1178_s0, %s741_s13 }
  0x4f   : >> { %p746_p5 = por %p745_p4, %p744_p2 }
  0x51   : >> { %p747_p6 = pnand %p746_p5, %p742_p1 }
  0x53   : >> { %750 = shalt.err (!%p747_p6)  }
  0x54   : >> { %s751_s26 = scalar_lea.vmem %s301_s12, 16  ;;  %s893_s19 = smov [#allocation2]  }
  0x55   : >> { %p752_p7 = scmp.ne.s32.totalorder %s301_s12, %s751_s26  ;;  %s753_s24 = sshll.u32 %s893_s19, 4  ;;  %s1051_s24 = int_to_ptr.vmem [resolvable:$false] %s753_s24 }
  0x56   : >> { %s1177_s9 = scalar_lea.vmem %s1051_s24, 128  ;;  %p756_p8 = scmp.lt.s32.totalorder %s301_s12, %s1051_s24 }
  0x57   : >> { %p757_p10 = scmp.lt.s32.totalorder %s1177_s9, %s751_s26 }
  0x59   : >> { %p758_p11 = por %p757_p10, %p756_p8 }
  0x5b   : >> { %p759_p12 = pnand %p758_p11, %p752_p7 }
  0x5d   : >> { %762 = shalt.err (!%p759_p12)  }
  0x5e   : >> { %303 = dma.hbm_to_vmem [thread:$0]  %s290_s1, 16, %s301_s12, %s292_s4 }
  0x5f   : >> { %s279_s20 = sadd.s32 1, %s885_s20  }
  0x60   : >> { %p276_p0 = scmp.ge.s32.totalorder %s279_s20, 8  }
  0x61   : > { %s1060_s13 = smov (%p276_p0), 0  }
  0x62   : > { %278 = sbr.rel (!%p276_p0) target bundleno = 64 (0x40), region = 120 }
  0x67 LB: >> { %p310_p3 = scmp.lt.s32.totalorder %s889_s13, 0  ;;  %s311_s17 = ssub.s32 0, %s889_s13  ;;  %s889_s13 = sphi %s1060_s13, %s309_s13  }
  0x68   : >> { %s589_s18 = smin.u32 %s889_s13, %s311_s17 }
  0x69   : >> { %s313_s1 = sand.u32 7, %s589_s18  }
  0x6a   : >> { %s314_s4 = ssub.s32 0, %s313_s1 }
  0x6b   : >> { %s1208_s4 = smov (!%p310_p3, %s314_s4), %s313_s1 }
  0x6c   : >> { %p591_p1 = scmp.lt.s32.totalorder %s1208_s4, 0  ;;  %s320_s25 = sadd.s32 8, %s1208_s4 }
  0x6e   : >> { %s1210_s25 = smov (!%p591_p1, %s320_s25), %s1208_s4 }
  0x6f   : >> { %s1068_s20 = scalar_lea.sflag [#allocation3], %s1210_s25 }
  0x70   : >> { %853 = dma.done.wait %s1068_s20, 16 }
  0x71   : >> { %854 = vsyncadd %s1068_s20, 4294967280  ;;  %s1073_s28 = sadd.s32 8, %s889_s13  ;;  %s519_s26 = scalar_lea.vmem [#allocation2], %s889_s13 }
  0x72   : >> { %p631_p2 = scmp.lt.s32.totalorder %s1073_s28, 8  ;;  %s331_s11 = sshra.s32 %s1073_s28, 7 }
  0x73   : >> { %s336_s12 = sand.u32 127, %s1073_s28  ;;  %s333_s14 = sadd.s32 %s873_s8, %s331_s11 }
  0x74   : >> { %s593_s21 = sshll.u32 %s333_s14, 7  ;;  %s520_s19 = scalar_lea.vmem %s519_s26, 8 [#allocation2] }
  0x75   : >> { %s337_s22 = sadd.s32 %s593_s21, %s336_s12  ;;  %s349_s18 = sshll.u32 %s520_s19, 4  ;;  %s350_s18 = int_to_ptr.vmem [resolvable:$true] %s349_s18 }
  0x76   : >> { %s616_s23 = scalar_select %p631_p2, [#allocation5], [#allocation16] }
  0x77   : >> { %s1212_s22 = smov (!%p631_p2, %s337_s22), 0 }
  0x78   : >> { %s338_s17 = sld [smem:[%s616_s23 + %s1212_s22]]  ;;  %s1192_s22 = scalar_lea.hbm %s1166_s2, 1024 }
  0x7e   : >> { %s594_s1 = sshll.u32 %s338_s17, 4 }
  0x7f   : >> { %s340_s9 = scalar_lea.hbm %s1166_s2, %s594_s1 }
  0x80   : >> { %s763_s0 = scalar_lea.hbm %s340_s9, 16  ;;  %p768_p7 = scmp.lt.s32.totalorder %s340_s9, %s1166_s2 }
  0x81   : >> { %p764_p4 = scmp.ne.s32.totalorder %s340_s9, %s763_s0  ;;  %p769_p8 = scmp.lt.s32.totalorder %s1192_s22, %s763_s0 }
  0x83   : >> { %p765_p5 = pnand %p764_p4, %p631_p2  ;;  %p770_p10 = por %p769_p8, %p768_p7 }
  0x85   : >> { %p766_p6 = pneg %p765_p5 }
  0x87   : >> { %p771_p11 = pnand %p770_p10, %p766_p6 }
  0x89   : >> { %774 = shalt.err (!%p771_p11)  }
  0x8a   : >> { %s775_s23 = scalar_lea.vmem %s350_s18, 16  ;;  %p782_p1 = scmp.lt.s32.totalorder %s350_s18, %s1051_s24 }
  0x8b   : >> { %p776_p12 = scmp.ne.s32.totalorder %s350_s18, %s775_s23  ;;  %s1193_s26 = scalar_lea.vmem %s1051_s24, 128 }
  0x8c   : >> { %p783_p4 = scmp.lt.s32.totalorder %s1193_s26, %s775_s23 }
  0x8d   : >> { %p777_p0 = pnand %p776_p12, %p631_p2 }
  0x8e   : >> { %p784_p5 = por %p783_p4, %p782_p1 }
  0x8f   : >> { %p778_p3 = pneg %p777_p0 }
  0x91   : >> { %p785_p13 = pnand %p784_p5, %p778_p3 }
  0x93   : >> { %788 = shalt.err (!%p785_p13)  }
  0x94   : >> { %618 = dma.hbm_to_vmem [thread:$0]  (%p631_p2), %s340_s9, 16, %s350_s18, %s1068_s20 }
  0x95   : >> { %s309_s13 = sadd.s32 1, %s889_s13  }
  0x96   : >> { %p306_p6 = scmp.ge.s32.totalorder %s309_s13, 8  }
  0x97   : > { %v356_v0 = vld [vmem:[%s1025_s16] sm:$0xff] (%p306_p6)  ;;  %v894_v1 = vmov (%p306_p6), 0   ;;  %v354_v4 = vld [vmem:[#allocation6] sm:$0xff] (%p306_p6)  ;;  %s600_s17 = sshll.u32 (%p306_p6), %s873_s8, 7  ;;  %s1194_s18 = scalar_lea.vmem (%p306_p6), [#allocation9], %s1019_s27 }
  0x98   : > { %308 = sbr.rel (!%p306_p6) target bundleno = 103 (0x67), region = 131  ;;  %700 = vset.pattern.permute.xlu0 (%p306_p6), %v894_v1  ;;  %vm358_vm0 = vcmp.eq.s32.totalorder (%p306_p6), %v356_v0, 1  ;;  %v353_v3 = vld [vmem:[#allocation2] sm:$0xff] (%p306_p6)  ;;  %s419_s1 = sshll.u32 (%p306_p6), %s1194_s18, 4  ;;  %s420_s1 = int_to_ptr.vmem [resolvable:$true] %s419_s1 }
  0x99   : > { %v360_v2 = vsel (%p306_p6), %vm358_vm0, 1, %v894_v1  ;;  %v355_v5 = vadd.f32 (%p306_p6), %v354_v4, %v353_v3  ;;  %v596_v6 = vld [vmem:[%s1167_s3] ss:$0 sm:$0xff] (%p306_p6)  ;;  %v595_v7 = vld [vmem:[%s1167_s3 + $0x1] ss:$0 sm:$0xff] (%p306_p6)  ;;  %s417_s11 = scalar_lea.hbm (%p306_p6), %s1171_s7, %s600_s17  ;;  %s1195_s12 = smov (%p306_p6), %s1194_s18 }
  0x9a   : > { %362 = vperm.xlu0 (%p306_p6), %700, %v360_v2   ;;  %v597_v19 = vld [vmem:[%s1169_s5] ss:$0 sm:$0xff] (%p306_p6)  ;;  %s1196_s14 = sand.u32 (%p306_p6), 1, %s865_s30   ;;  %s789_s22 = scalar_lea.vmem (%p306_p6), %s420_s1, 128 }
  0x9b   : > { %v598_v21 = vld [vmem:[%s1170_s6] ss:$0 sm:$0xff] (%p306_p6)  ;;  %s405_s21 = scalar_lea.sflag (%p306_p6), [#allocation8], %s1196_s14  ;;  %p790_p13 = scmp.ne.s32.totalorder (%p306_p6), %s420_s1, %s789_s22 }
  0x9c   : > { %s895_s23 = smov (%p306_p6), [#allocation9]  }
  0x9d   : > { %p791_p2 = pnand %p790_p13, %p979_p9  ;;  %s793_s8 = sshll.u32 %s895_s23, 4  ;;  %s794_s8 = int_to_ptr.vmem [resolvable:$false] %s793_s8 }
  0x9e   : > { %s795_s26 = scalar_lea.vmem %s794_s8, 256  ;;  %p796_p8 = scmp.lt.s32.totalorder %s420_s1, %s794_s8 }
  0x9f   : > { %p792_p7 = pneg %p791_p2  ;;  %p797_p10 = scmp.lt.s32.totalorder %s795_s26, %s789_s22 }
  0xa1   : > { %p798_p11 = por %p797_p10, %p796_p8 }
  0xa3   : > { %p799_p12 = pnand %p798_p11, %p792_p7 }
 0x115   : > { %v363_v8 = vpop.permute.xlu0 %362 }
 0x116   : > { %vm364_vm1 = vcmp.eq.s32.totalorder %v363_v8, 1 }
 0x117   : > { %v373_v9 = vsel %vm364_vm1, %v595_v7, %v596_v6 }
 0x118   : > { %v374_v10 = vadd.f32 %v373_v9, %v355_v5 }
 0x11a   : > { %375 = vadd.xlane.f32.xlu0 %v374_v10 }
 0x1a3   : > { %v376_v11 = vpop.xlane.xlu0 %375 }
 0x1a4   : > { %v378_v12 = vmul.f32 0.0078125, %v376_v11 }
 0x1a6   : > { %v379_v13 = vsub.f32 %v374_v10, %v378_v12 }
 0x1a8   : > { %v380_v14 = vmul.f32 %v379_v13, %v379_v13 }
 0x1aa   : > { %381 = vadd.xlane.f32.xlu1 %v380_v14 }
 0x233   : > { %v382_v15 = vpop.xlane.xlu1 %381 }
 0x234   : > { %v383_v16 = vmul.f32 0.0078125, %v382_v15 }
 0x236   : > { %v384_v17 = vadd.f32 1e-12, %v383_v16 }
 0x238   : > { %701 = vrsqrt.f32 %v384_v17 }
 0x245   : > { %v702_v18 = vpop.eup %701 }
 0x246   : > { %v386_v20 = vmul.f32 %v702_v18, %v379_v13 }
 0x248   : > { %v394_v22 = vmul.f32 %v597_v19, %v386_v20 }
 0x24a   : > { %v402_v23 = vadd.f32 %v598_v21, %v394_v22 }
 0x24c   : > { %403 = vst [vmem:[%s1195_s12] sm:$0xff] %v402_v23 }
 0x24d   : > { %802 = shalt.err (!%p799_p12)
}
 0x24e   : > { %s803_s0 = scalar_lea.hbm %s417_s11, 128  ;;  %s807_s9 = scalar_lea.hbm %s1171_s7, 256 }
 0x24f   : > { %p804_p0 = scmp.ne.s32.totalorder %s417_s11, %s803_s0  ;;  %p808_p4 = scmp.lt.s32.totalorder %s417_s11, %s1171_s7 }
 0x250   : > { %p809_p5 = scmp.lt.s32.totalorder %s807_s9, %s803_s0 }
 0x251   : > { %p805_p3 = pnand %p804_p0, %p979_p9 }
 0x252   : > { %p810_p6 = por %p809_p5, %p808_p4 }
 0x253   : > { %p806_p1 = pneg %p805_p3 }
 0x255   : > { %p811_p13 = pnand %p810_p6, %p806_p1 }
 0x257   : > { %814 = shalt.err (!%p811_p13)
}
 0x258   : > { %619 = dma.vmem_to_hbm [thread:$0]  (%p979_p9), %s420_s1, 128, %s417_s11, %s405_s21  }
 0x259 PF: > { %s1197_s24 = sld [smem:[#allocation24_spill]]  ;;  %p632_p2 = scmp.ge.s32.totalorder %s881_s10, 2 }
 0x25a   : > { %s431_s13 = sand.u32 1, %s861_s29  }
 0x25b   : > { %s432_s19 = scalar_lea.sflag [#allocation8], %s431_s13 }
 0x25f   : > { %p1198_p7 = scmp.ne.s32.totalorder %s1197_s24, 0 }
 0x261   : > { %p626_p8 = pnand %p632_p2, %p1198_p7 }
 0x263   : > { %p627_p10 = pneg %p626_p8 }
 0x265   : > { %856 = dma.done.wait (%p627_p10), %s432_s19, 128  }
 0x266   : > { %858 = vsyncadd (%p627_p10), %s432_s19, 4294967168  ;;  %s27_s10 = sadd.s32 1, %s881_s10   ;;  %s1199_s17 = sld [smem:[#allocation21_spill]] }
 0x267   : > { %p24_p11 = scmp.ge.s32.totalorder %s27_s10, 4   ;;  %s1200_s0 = sld [smem:[#allocation25_spill]] }
 0x268   : > { %s1201_s8 = sld [smem:[#allocation22_spill]]  ;;  %s1203_s29 = smov %s865_s30 }
 0x269   : > { %s1202_s9 = sld [smem:[#allocation23_spill]]  ;;  %26 = sbr.rel (!%p24_p11) target bundleno = 21 (0x15), region = 142 }
 0x26c   : > { %s1204_s30 = smov %s1199_s17 }
 0x26e   :  { %437 = vsyncpa [#allocation7], 1 }
 0x26f   :  { %439 = vsyncpa [#allocation7 + $0x1], 1 }
 0x270   :  { %440 = vsyncpa [#allocation8], 1 }
 0x271   :  { %442 = vsyncpa [#allocation8 + $0x1], 1 }
 0x272   :  { %443 = vsyncmov [#allocation3] }
 0x275   :  { %s444_s15 = vpop.sfrf %443 }
 0x276   :  { %p603_p9 = scmp.ne.s32.totalorder %s444_s15, 0 }
 0x278   :  { %448 = shalt.err (%p603_p9)  }
 0x279   :  { %450 = vsyncmov [#allocation3 + $0x1] }
 0x27c   :  { %s451_s18 = vpop.sfrf %450 }
 0x27d   :  { %p604_p12 = scmp.ne.s32.totalorder %s451_s18, 0 }
 0x27f   :  { %455 = shalt.err (%p604_p12)  }
 0x280   :  { %457 = vsyncmov [#allocation3 + $0x2] }
 0x283   :  { %s458_s1 = vpop.sfrf %457 }
 0x284   :  { %p605_p0 = scmp.ne.s32.totalorder %s458_s1, 0 }
 0x286   :  { %462 = shalt.err (%p605_p0)  }
 0x287   :  { %464 = vsyncmov [#allocation3 + $0x3] }
 0x28a   :  { %s465_s4 = vpop.sfrf %464 }
 0x28b   :  { %p606_p3 = scmp.ne.s32.totalorder %s465_s4, 0 }
 0x28d   :  { %469 = shalt.err (%p606_p3)  }
 0x28e   :  { %471 = vsyncmov [#allocation3 + $0x4] }
 0x291   :  { %s472_s2 = vpop.sfrf %471 }
 0x292   :  { %p607_p1 = scmp.ne.s32.totalorder %s472_s2, 0 }
 0x294   :  { %476 = shalt.err (%p607_p1)  }
 0x295   :  { %478 = vsyncmov [#allocation3 + $0x5] }
 0x298   :  { %s479_s3 = vpop.sfrf %478 }
 0x299   :  { %p608_p4 = scmp.ne.s32.totalorder %s479_s3, 0 }
 0x29b   :  { %483 = shalt.err (%p608_p4)  }
 0x29c   :  { %485 = vsyncmov [#allocation3 + $0x6] }
 0x29f   :  { %s486_s5 = vpop.sfrf %485 }
 0x2a0   :  { %p609_p5 = scmp.ne.s32.totalorder %s486_s5, 0 }
 0x2a2   :  { %490 = shalt.err (%p609_p5)  }
 0x2a3   :  { %492 = vsyncmov [#allocation3 + $0x7] }
 0x2a6   :  { %s493_s6 = vpop.sfrf %492 }
 0x2a7   :  { %p610_p6 = scmp.ne.s32.totalorder %s493_s6, 0 }
 0x2a9   :  { %497 = shalt.err (%p610_p6)  }

</bundles_post_ra>
